<compile_context>
chip_gen: v7x
topology: tpu7x:2x2x1
jax: 0.10.0
libtpu: 0.0.40
codegen_flags: <defaults>
</compile_context>

<pallas_src>
import math

import numpy as np

import jax
import jax.numpy as jnp
from jax.experimental import pallas as pl
from jax.experimental.pallas import tpu as pltpu

WINDOW_SIZE = 11
SIGMA = 1.5
_F32 = 4  # bytes per float32


# ----------------------------------------------------------------------------
# Compile-time constants: 1-D gaussian + banded Toeplitz blocks.
# ----------------------------------------------------------------------------
def _gaussian_np(window_size: int, sigma: float) -> np.ndarray:
    # Same math as the PyTorch `gaussian()` helper.
    g = np.array(
        [math.exp(-((x - window_size // 2) ** 2) / (2.0 * sigma ** 2))
         for x in range(window_size)],
        dtype=np.float64)
    return (g / g.sum()).astype(np.float32)


def _width_band_blocks(n: int, g: np.ndarray, tile: int = 128):
    """Column-tiled band blocks of the width-pass ("same" conv) Toeplitz.

    Full Toeplitz: T[k, c] = g[k - c + pad]  (x @ T == zero-padded 1-D conv
    along the last axis).  For output-column tile j (width `tile`) only input
    columns [k0_j, k0_j + ks) can hit the 11-wide band, so we only ship
        twb[j] = T[k0_j : k0_j + ks,  j*tile : (j+1)*tile].
    Degenerates to the dense (n, n) matrix (one tile) when n <= tile or
    n % tile != 0.

    Returns (twb [n_tiles, ks, tile], k0s, tile, ks).
    """
    k = g.shape[0]
    pad = k // 2
    if n <= tile or n % tile != 0:
        tile = n                      # dense fallback: a single column tile
    n_tiles = n // tile
    ks = min(n, tile + 2 * pad)

    twb = np.zeros((n_tiles, ks, tile), dtype=np.float32)
    k0s = []
    kk = np.arange(ks)[:, None]
    cc = np.arange(tile)[None, :]
    for j in range(n_tiles):
        c0 = j * tile
        k0 = min(max(c0 - pad, 0), n - ks)
        k0s.append(int(k0))
        d = (k0 + kk) - (c0 + cc) + pad
        mask = (d >= 0) & (d < k)
        twb[j][mask] = g[d[mask]]
    return twb, k0s, tile, ks


def _height_toeplitz_t_np(n: int, g: np.ndarray) -> np.ndarray:
    """ThT[h, k] = g[k - h + pad];  ThT @ y == zero-padded conv along rows."""
    k = g.shape[0]
    pad = k // 2
    ii = np.arange(n)[:, None]
    jj = np.arange(n)[None, :]
    d = jj - ii + pad
    mask = (d >= 0) & (d < k)
    t = np.zeros((n, n), dtype=np.float32)
    t[mask] = g[d[mask]]
    return t


# ----------------------------------------------------------------------------
# Generation-aware VMEM budgeting and planes-per-step choice.
# ----------------------------------------------------------------------------
def _vmem_capacity_bytes() -> int:
    try:
        info = pltpu.get_tpu_info()
        cap = int(getattr(info, "vmem_capacity_bytes", 0) or 0)
        if cap > 0:
            return cap
    except Exception:
        pass
    return 64 * 1024 * 1024            # conservative v7x-class default


def _vmem_budget():
    cap = _vmem_capacity_bytes()
    # ~24 MiB scoped limit on 64-MiB-VMEM chips (v7x-class), 48 MiB on the
    # 128-MiB chips (v5e/v6e); leave the rest as headroom for the compiler.
    limit = min(cap * 3 // 8, 48 * 1024 * 1024)
    limit = max(limit, 16 * 1024 * 1024)
    return int(limit), (limit * 3) // 4


def _estimate_step_vmem(p, h, w, n_wtiles, ks, tc):
    inputs = 2 * 2 * p * h * w * _F32                    # x1, x2 double-buffered
    weights = 2 * (n_wtiles * ks * tc + h * h) * _F32    # TwB + ThT, 2 buffers
    outputs = 2 * 1 * (n_wtiles * tc) * _F32             # (1, W) partial row
    # ~2 full planes (x1p, x2p) + ~12 column-tile-sized temps live at once.
    live = (2 * h * w + 12 * h * max(ks, tc)) * _F32
    return inputs + weights + outputs + live


def _choose_planes_per_step(n, h, w, n_wtiles, ks, tc, budget):
    cands = [p for p in range(1, n + 1)
             if n % p == 0 and p * n_wtiles <= 64
             and _estimate_step_vmem(p, h, w, n_wtiles, ks, tc) <= budget]
    if not cands:
        return 1
    # v7x megacore: prefer an even number (>= 4) of parallel grid steps so the
    # two TensorCores stay balanced; among those take the largest P.
    pref = [p for p in cands if (n // p) >= 4 and (n // p) % 2 == 0]
    pool = pref if pref else cands
    return max(pool)


# ----------------------------------------------------------------------------
# Kernel
# ----------------------------------------------------------------------------
def _make_ssim_kernel(planes, n_wtiles, k0s, ks, tc):
    """One grid step = `planes` image planes, processed one plane at a time.

    consts_ref: SMEM (2,)            -> [C1, C2] (data dependent)
    x1_ref/x2_ref: VMEM (P, H, W)    -> raw (unpadded) planes
    twb_ref: VMEM (n_wtiles, ks, tc) -> banded width-pass Toeplitz blocks
    tht_ref: VMEM (H, H)             -> height-pass Toeplitz (transposed band)
    out_ref: VMEM (1, W)             -> per-step partial column sums of ssim
    """
    def kernel(consts_ref, x1_ref, x2_ref, twb_ref, tht_ref, out_ref):
        c1 = consts_ref[0]
        c2 = consts_ref[1]
        tht = tht_ref[...]                                  # (H, H), hoisted

        row_sums = [None] * n_wtiles                        # per-tile (1, tc)

        for p in range(planes):
            x1p = x1_ref[p]                                 # (H, W)
            x2p = x2_ref[p]
            for j in range(n_wtiles):
                k0 = k0s[j]
                twb = twb_ref[j]                            # (ks, tc)
                a1 = x1p[:, k0:k0 + ks]
                a2 = x2p[:, k0:k0 + ks]

                def conv(x, twb=twb):
                    # Width pass on the banded block (only the K columns whose
                    # band intersects this output tile), then height pass.
                    t = jnp.dot(x, twb, preferred_element_type=jnp.float32)
                    return jnp.dot(tht, t, preferred_element_type=jnp.float32)

                mu1 = conv(a1)
                mu2 = conv(a2)
                mu1_sq = mu1 * mu1
                mu2_sq = mu2 * mu2
                mu1_mu2 = mu1 * mu2

                # Consume each conv result immediately (lean epilogue: fewer
                # simultaneously-live plane-sized temps -> fewer spills).
                sigma1_sq = conv(a1 * a1) - mu1_sq
                sigma2_sq = conv(a2 * a2) - mu2_sq
                sigma12 = conv(a1 * a2) - mu1_mu2

                v1 = 2.0 * sigma12 + c2
                v2 = sigma1_sq + sigma2_sq + c2
                num = (2.0 * mu1_mu2 + c1) * v1
                den = (mu1_sq + mu2_sq + c1) * v2
                # NOTE: pl.reciprocal(den, approx=True) would move this to the
                # EUP (a v5e win) but its approx error is borderline vs the
                # 1e-3 validation tolerance on the ratio map; keep exact.
                ssim_tile = num / den

                s = jnp.sum(ssim_tile, axis=0, keepdims=True)   # (1, tc)
                row_sums[j] = s if row_sums[j] is None else row_sums[j] + s

        for j in range(n_wtiles):
            out_ref[:, j * tc:(j + 1) * tc] = row_sums[j]

    return kernel


# ----------------------------------------------------------------------------
# Wrapper (mirrors SSIM.forward: returns 1 - ssim mean, size_average=True)
# ----------------------------------------------------------------------------
def ssim_loss(img1, img2, window_size=WINDOW_SIZE):
    b, c, h, w = img1.shape
    n = b * c

    img1 = img1.astype(jnp.float32)
    img2 = img2.astype(jnp.float32)

    # val_range=None branch of the reference (data-dependent dynamic range).
    max_val = jnp.where(jnp.max(img1) > 128.0, 255.0, 1.0)
    min_val = jnp.where(jnp.min(img1) < -0.5, -1.0, 0.0)
    l = max_val - min_val
    consts = jnp.stack([(0.01 * l) ** 2, (0.03 * l) ** 2]).astype(jnp.float32)

    # Compile-time banded Toeplitz operands.
    g = _gaussian_np(window_size, SIGMA)
    twb_np, k0s, tc, ks = _width_band_blocks(w, g, tile=128)
    n_wtiles = twb_np.shape[0]
    tht_np = _height_toeplitz_t_np(h, g)

    vmem_limit, budget = _vmem_budget()
    planes = _choose_planes_per_step(n, h, w, n_wtiles, ks, tc, budget)
    g_steps = n // planes

    x1 = img1.reshape(n, h, w)
    x2 = img2.reshape(n, h, w)
    twb = jnp.asarray(twb_np)
    tht = jnp.asarray(tht_np)

    kernel = _make_ssim_kernel(planes, n_wtiles, k0s, ks, tc)

    partial = pl.pallas_call(
        kernel,
        out_shape=jax.ShapeDtypeStruct((g_steps, 1, w), jnp.float32),
        grid_spec=pltpu.PrefetchScalarGridSpec(
            num_scalar_prefetch=1,                       # [C1, C2] -> SMEM
            grid=(g_steps,),
            in_specs=[
                pl.BlockSpec((planes, h, w), lambda i, _s: (i, 0, 0)),   # x1
                pl.BlockSpec((planes, h, w), lambda i, _s: (i, 0, 0)),   # x2
                pl.BlockSpec((n_wtiles, ks, tc), lambda i, _s: (0, 0, 0)),
                pl.BlockSpec((h, h), lambda i, _s: (0, 0)),
            ],
            out_specs=pl.BlockSpec((None, 1, w), lambda i, _s: (i, 0, 0)),
        ),
        compiler_params=pltpu.CompilerParams(
            dimension_semantics=("parallel",),
            vmem_limit_bytes=int(vmem_limit)),
    )(consts, x1, x2, twb, tht)

    s_score = jnp.sum(partial) / (n * h * w)   # size_average=True
    return 1.0 - s_score


# ----------------------------------------------------------------------------
# Pure-JAX reference (mirrors the PyTorch depthwise-conv path)
# ----------------------------------------------------------------------------
def _ssim_loss_ref(img1, img2, window_size=WINDOW_SIZE):
    b, c, h, w = img1.shape
    pad = window_size // 2
    g = jnp.asarray(_gaussian_np(window_size, SIGMA))
    win2d = jnp.outer(g, g)
    window = jnp.broadcast_to(win2d, (c, 1, window_size, window_size))

    def dwconv(x):
        return jax.lax.conv_general_dilated(
            x, window, window_strides=(1, 1),
            padding=((pad, pad), (pad, pad)),
            dimension_numbers=("NCHW", "OIHW", "NCHW"),
            feature_group_count=c)

    max_val = jnp.where(jnp.max(img1) > 128.0, 255.0, 1.0)
    min_val = jnp.where(jnp.min(img1) < -0.5, -1.0, 0.0)
    l = max_val - min_val
    c1 = (0.01 * l) ** 2
    c2 = (0.03 * l) ** 2

    mu1, mu2 = dwconv(img1), dwconv(img2)
    mu1_sq, mu2_sq, mu1_mu2 = mu1 * mu1, mu2 * mu2, mu1 * mu2
    sigma1_sq = dwconv(img1 * img1) - mu1_sq
    sigma2_sq = dwconv(img2 * img2) - mu2_sq
    sigma12 = dwconv(img1 * img2) - mu1_mu2
    v1 = 2.0 * sigma12 + c2
    v2 = sigma1_sq + sigma2_sq + c2
    ssim_map = (2 * mu1_mu2 + c1) * v1 / ((mu1_sq + mu2_sq + c1) * v2)
    return 1.0 - jnp.mean(ssim_map)


if __name__ == "__main__":
    key = jax.random.PRNGKey(0)
    k1, k2 = jax.random.split(key)
    B, C, H, W = 2, 4, 16, 16
    img1 = jax.random.normal(k1, (B, C, H, W), dtype=jnp.float32)
    img2 = jax.random.normal(k2, (B, C, H, W), dtype=jnp.float32)

    out = jax.block_until_ready(jax.jit(ssim_loss)(img1, img2))
    ref = jax.block_until_ready(_ssim_loss_ref(img1, img2))

    assert jnp.isfinite(out), "non-finite SSIM loss"
    assert abs(float(out) - float(ref)) < 1e-3, (float(out), float(ref))
    print("KERNEL_OK")
</pallas_src>

<mosaic_0001>
module attributes {stable_mosaic.version = 11 : i64} {
  func.func @kernel(%arg0: i32, %arg1: memref<2xf32, #tpu.memory_space<smem>>, %arg2: memref<2x16x16xf32, #tpu.memory_space<vmem>>, %arg3: memref<2x16x16xf32, #tpu.memory_space<vmem>>, %arg4: memref<1x16x16xf32, #tpu.memory_space<vmem>>, %arg5: memref<16x16xf32, #tpu.memory_space<vmem>>, %arg6: memref<1x1x16xf32, #tpu.memory_space<vmem>>) attributes {dimension_semantics = [#tpu.dimension_semantics<parallel>], iteration_bounds = array<i64: 4>, scalar_prefetch = 1 : i64, scratch_operands = 0 : i64, tpu.core_type = #tpu.core_type<tc>, window_params = [{transform_indices = @transform_0, window_bounds = array<i64: 2, 16, 16>}, {transform_indices = @transform_1, window_bounds = array<i64: 2, 16, 16>}, {pipeline_mode = #tpu.pipeline_mode<synchronous>, transform_indices = @transform_2, window_bounds = array<i64: 1, 16, 16>}, {pipeline_mode = #tpu.pipeline_mode<synchronous>, transform_indices = @transform_3, window_bounds = array<i64: 16, 16>}, {transform_indices = @transform_4, window_bounds = array<i64: 1, 1, 16>}]} {
    %c0 = arith.constant 0 : index
    %0 = memref.load %arg1[%c0] : memref<2xf32, #tpu.memory_space<smem>>
    %c1 = arith.constant 1 : index
    %1 = memref.load %arg1[%c1] : memref<2xf32, #tpu.memory_space<smem>>
    %c0_0 = arith.constant 0 : index
    %c0_1 = arith.constant 0 : index
    %2 = vector.load %arg5[%c0_0, %c0_1] : memref<16x16xf32, #tpu.memory_space<vmem>>, vector<16x16xf32>
    %c0_2 = arith.constant 0 : index
    %c0_3 = arith.constant 0 : index
    %c0_4 = arith.constant 0 : index
    %3 = vector.load %arg2[%c0_2, %c0_3, %c0_4] : memref<2x16x16xf32, #tpu.memory_space<vmem>>, vector<1x16x16xf32>
    %4 = vector.shape_cast %3 : vector<1x16x16xf32> to vector<16x16xf32>
    %c0_5 = arith.constant 0 : index
    %c0_6 = arith.constant 0 : index
    %c0_7 = arith.constant 0 : index
    %5 = vector.load %arg3[%c0_5, %c0_6, %c0_7] : memref<2x16x16xf32, #tpu.memory_space<vmem>>, vector<1x16x16xf32>
    %6 = vector.shape_cast %5 : vector<1x16x16xf32> to vector<16x16xf32>
    %c0_8 = arith.constant 0 : index
    %c0_9 = arith.constant 0 : index
    %c0_10 = arith.constant 0 : index
    %7 = vector.load %arg4[%c0_8, %c0_9, %c0_10] : memref<1x16x16xf32, #tpu.memory_space<vmem>>, vector<1x16x16xf32>
    %8 = vector.shape_cast %7 : vector<1x16x16xf32> to vector<16x16xf32>
    %cst = arith.constant dense<0.000000e+00> : vector<16x16xf32>
    %9 = tpu.matmul %4, %8, %cst {dimension_numbers = #tpu.dot_dimension_numbers<[1], [0], [0], [1], [0, 0, 1, 1], [], []>} : vector<16x16xf32>, vector<16x16xf32>, vector<16x16xf32> -> vector<16x16xf32>
    %cst_11 = arith.constant dense<0.000000e+00> : vector<16x16xf32>
    %10 = tpu.matmul %2, %9, %cst_11 {dimension_numbers = #tpu.dot_dimension_numbers<[1], [0], [0], [1], [0, 0, 1, 1], [], []>} : vector<16x16xf32>, vector<16x16xf32>, vector<16x16xf32> -> vector<16x16xf32>
    %cst_12 = arith.constant dense<0.000000e+00> : vector<16x16xf32>
    %11 = tpu.matmul %6, %8, %cst_12 {dimension_numbers = #tpu.dot_dimension_numbers<[1], [0], [0], [1], [0, 0, 1, 1], [], []>} : vector<16x16xf32>, vector<16x16xf32>, vector<16x16xf32> -> vector<16x16xf32>
    %cst_13 = arith.constant dense<0.000000e+00> : vector<16x16xf32>
    %12 = tpu.matmul %2, %11, %cst_13 {dimension_numbers = #tpu.dot_dimension_numbers<[1], [0], [0], [1], [0, 0, 1, 1], [], []>} : vector<16x16xf32>, vector<16x16xf32>, vector<16x16xf32> -> vector<16x16xf32>
    %13 = arith.mulf %10, %10 : vector<16x16xf32>
    %14 = arith.mulf %12, %12 : vector<16x16xf32>
    %15 = arith.mulf %10, %12 : vector<16x16xf32>
    %16 = arith.mulf %4, %4 : vector<16x16xf32>
    %cst_14 = arith.constant dense<0.000000e+00> : vector<16x16xf32>
    %17 = tpu.matmul %16, %8, %cst_14 {dimension_numbers = #tpu.dot_dimension_numbers<[1], [0], [0], [1], [0, 0, 1, 1], [], []>} : vector<16x16xf32>, vector<16x16xf32>, vector<16x16xf32> -> vector<16x16xf32>
    %cst_15 = arith.constant dense<0.000000e+00> : vector<16x16xf32>
    %18 = tpu.matmul %2, %17, %cst_15 {dimension_numbers = #tpu.dot_dimension_numbers<[1], [0], [0], [1], [0, 0, 1, 1], [], []>} : vector<16x16xf32>, vector<16x16xf32>, vector<16x16xf32> -> vector<16x16xf32>
    %19 = arith.subf %18, %13 : vector<16x16xf32>
    %20 = arith.mulf %6, %6 : vector<16x16xf32>
    %cst_16 = arith.constant dense<0.000000e+00> : vector<16x16xf32>
    %21 = tpu.matmul %20, %8, %cst_16 {dimension_numbers = #tpu.dot_dimension_numbers<[1], [0], [0], [1], [0, 0, 1, 1], [], []>} : vector<16x16xf32>, vector<16x16xf32>, vector<16x16xf32> -> vector<16x16xf32>
    %cst_17 = arith.constant dense<0.000000e+00> : vector<16x16xf32>
    %22 = tpu.matmul %2, %21, %cst_17 {dimension_numbers = #tpu.dot_dimension_numbers<[1], [0], [0], [1], [0, 0, 1, 1], [], []>} : vector<16x16xf32>, vector<16x16xf32>, vector<16x16xf32> -> vector<16x16xf32>
    %23 = arith.subf %22, %14 : vector<16x16xf32>
    %24 = arith.mulf %4, %6 : vector<16x16xf32>
    %cst_18 = arith.constant dense<0.000000e+00> : vector<16x16xf32>
    %25 = tpu.matmul %24, %8, %cst_18 {dimension_numbers = #tpu.dot_dimension_numbers<[1], [0], [0], [1], [0, 0, 1, 1], [], []>} : vector<16x16xf32>, vector<16x16xf32>, vector<16x16xf32> -> vector<16x16xf32>
    %cst_19 = arith.constant dense<0.000000e+00> : vector<16x16xf32>
    %26 = tpu.matmul %2, %25, %cst_19 {dimension_numbers = #tpu.dot_dimension_numbers<[1], [0], [0], [1], [0, 0, 1, 1], [], []>} : vector<16x16xf32>, vector<16x16xf32>, vector<16x16xf32> -> vector<16x16xf32>
    %27 = arith.subf %26, %15 : vector<16x16xf32>
    %cst_20 = arith.constant 2.000000e+00 : f32
    %28 = vector.broadcast %cst_20 : f32 to vector<16x16xf32>
    %29 = arith.mulf %28, %27 : vector<16x16xf32>
    %30 = vector.broadcast %1 : f32 to vector<16x16xf32>
    %31 = arith.addf %29, %30 : vector<16x16xf32>
    %32 = arith.addf %19, %23 : vector<16x16xf32>
    %33 = vector.broadcast %1 : f32 to vector<16x16xf32>
    %34 = arith.addf %32, %33 : vector<16x16xf32>
    %cst_21 = arith.constant 2.000000e+00 : f32
    %35 = vector.broadcast %cst_21 : f32 to vector<16x16xf32>
    %36 = arith.mulf %35, %15 : vector<16x16xf32>
    %37 = vector.broadcast %0 : f32 to vector<16x16xf32>
    %38 = arith.addf %36, %37 : vector<16x16xf32>
    %39 = arith.mulf %38, %31 : vector<16x16xf32>
    %40 = arith.addf %13, %14 : vector<16x16xf32>
    %41 = vector.broadcast %0 : f32 to vector<16x16xf32>
    %42 = arith.addf %40, %41 : vector<16x16xf32>
    %43 = arith.mulf %42, %34 : vector<16x16xf32>
    %44 = arith.divf %39, %43 : vector<16x16xf32>
    %cst_22 = arith.constant dense<0.000000e+00> : vector<16xf32>
    %45 = vector.multi_reduction <add>, %44, %cst_22 [0] : vector<16x16xf32> to vector<16xf32>
    %46 = vector.shape_cast %45 : vector<16xf32> to vector<1x16xf32>
    %c1_23 = arith.constant 1 : index
    %c0_24 = arith.constant 0 : index
    %c0_25 = arith.constant 0 : index
    %47 = vector.load %arg2[%c1_23, %c0_24, %c0_25] : memref<2x16x16xf32, #tpu.memory_space<vmem>>, vector<1x16x16xf32>
    %48 = vector.shape_cast %47 : vector<1x16x16xf32> to vector<16x16xf32>
    %c1_26 = arith.constant 1 : index
    %c0_27 = arith.constant 0 : index
    %c0_28 = arith.constant 0 : index
    %49 = vector.load %arg3[%c1_26, %c0_27, %c0_28] : memref<2x16x16xf32, #tpu.memory_space<vmem>>, vector<1x16x16xf32>
    %50 = vector.shape_cast %49 : vector<1x16x16xf32> to vector<16x16xf32>
    %c0_29 = arith.constant 0 : index
    %c0_30 = arith.constant 0 : index
    %c0_31 = arith.constant 0 : index
    %51 = vector.load %arg4[%c0_29, %c0_30, %c0_31] : memref<1x16x16xf32, #tpu.memory_space<vmem>>, vector<1x16x16xf32>
    %52 = vector.shape_cast %51 : vector<1x16x16xf32> to vector<16x16xf32>
    %cst_32 = arith.constant dense<0.000000e+00> : vector<16x16xf32>
    %53 = tpu.matmul %48, %52, %cst_32 {dimension_numbers = #tpu.dot_dimension_numbers<[1], [0], [0], [1], [0, 0, 1, 1], [], []>} : vector<16x16xf32>, vector<16x16xf32>, vector<16x16xf32> -> vector<16x16xf32>
    %cst_33 = arith.constant dense<0.000000e+00> : vector<16x16xf32>
    %54 = tpu.matmul %2, %53, %cst_33 {dimension_numbers = #tpu.dot_dimension_numbers<[1], [0], [0], [1], [0, 0, 1, 1], [], []>} : vector<16x16xf32>, vector<16x16xf32>, vector<16x16xf32> -> vector<16x16xf32>
    %cst_34 = arith.constant dense<0.000000e+00> : vector<16x16xf32>
    %55 = tpu.matmul %50, %52, %cst_34 {dimension_numbers = #tpu.dot_dimension_numbers<[1], [0], [0], [1], [0, 0, 1, 1], [], []>} : vector<16x16xf32>, vector<16x16xf32>, vector<16x16xf32> -> vector<16x16xf32>
    %cst_35 = arith.constant dense<0.000000e+00> : vector<16x16xf32>
    %56 = tpu.matmul %2, %55, %cst_35 {dimension_numbers = #tpu.dot_dimension_numbers<[1], [0], [0], [1], [0, 0, 1, 1], [], []>} : vector<16x16xf32>, vector<16x16xf32>, vector<16x16xf32> -> vector<16x16xf32>
    %57 = arith.mulf %54, %54 : vector<16x16xf32>
    %58 = arith.mulf %56, %56 : vector<16x16xf32>
    %59 = arith.mulf %54, %56 : vector<16x16xf32>
    %60 = arith.mulf %48, %48 : vector<16x16xf32>
    %cst_36 = arith.constant dense<0.000000e+00> : vector<16x16xf32>
    %61 = tpu.matmul %60, %52, %cst_36 {dimension_numbers = #tpu.dot_dimension_numbers<[1], [0], [0], [1], [0, 0, 1, 1], [], []>} : vector<16x16xf32>, vector<16x16xf32>, vector<16x16xf32> -> vector<16x16xf32>
    %cst_37 = arith.constant dense<0.000000e+00> : vector<16x16xf32>
    %62 = tpu.matmul %2, %61, %cst_37 {dimension_numbers = #tpu.dot_dimension_numbers<[1], [0], [0], [1], [0, 0, 1, 1], [], []>} : vector<16x16xf32>, vector<16x16xf32>, vector<16x16xf32> -> vector<16x16xf32>
    %63 = arith.subf %62, %57 : vector<16x16xf32>
    %64 = arith.mulf %50, %50 : vector<16x16xf32>
    %cst_38 = arith.constant dense<0.000000e+00> : vector<16x16xf32>
    %65 = tpu.matmul %64, %52, %cst_38 {dimension_numbers = #tpu.dot_dimension_numbers<[1], [0], [0], [1], [0, 0, 1, 1], [], []>} : vector<16x16xf32>, vector<16x16xf32>, vector<16x16xf32> -> vector<16x16xf32>
    %cst_39 = arith.constant dense<0.000000e+00> : vector<16x16xf32>
    %66 = tpu.matmul %2, %65, %cst_39 {dimension_numbers = #tpu.dot_dimension_numbers<[1], [0], [0], [1], [0, 0, 1, 1], [], []>} : vector<16x16xf32>, vector<16x16xf32>, vector<16x16xf32> -> vector<16x16xf32>
    %67 = arith.subf %66, %58 : vector<16x16xf32>
    %68 = arith.mulf %48, %50 : vector<16x16xf32>
    %cst_40 = arith.constant dense<0.000000e+00> : vector<16x16xf32>
    %69 = tpu.matmul %68, %52, %cst_40 {dimension_numbers = #tpu.dot_dimension_numbers<[1], [0], [0], [1], [0, 0, 1, 1], [], []>} : vector<16x16xf32>, vector<16x16xf32>, vector<16x16xf32> -> vector<16x16xf32>
    %cst_41 = arith.constant dense<0.000000e+00> : vector<16x16xf32>
    %70 = tpu.matmul %2, %69, %cst_41 {dimension_numbers = #tpu.dot_dimension_numbers<[1], [0], [0], [1], [0, 0, 1, 1], [], []>} : vector<16x16xf32>, vector<16x16xf32>, vector<16x16xf32> -> vector<16x16xf32>
    %71 = arith.subf %70, %59 : vector<16x16xf32>
    %cst_42 = arith.constant 2.000000e+00 : f32
    %72 = vector.broadcast %cst_42 : f32 to vector<16x16xf32>
    %73 = arith.mulf %72, %71 : vector<16x16xf32>
    %74 = vector.broadcast %1 : f32 to vector<16x16xf32>
    %75 = arith.addf %73, %74 : vector<16x16xf32>
    %76 = arith.addf %63, %67 : vector<16x16xf32>
    %77 = vector.broadcast %1 : f32 to vector<16x16xf32>
    %78 = arith.addf %76, %77 : vector<16x16xf32>
    %cst_43 = arith.constant 2.000000e+00 : f32
    %79 = vector.broadcast %cst_43 : f32 to vector<16x16xf32>
    %80 = arith.mulf %79, %59 : vector<16x16xf32>
    %81 = vector.broadcast %0 : f32 to vector<16x16xf32>
    %82 = arith.addf %80, %81 : vector<16x16xf32>
    %83 = arith.mulf %82, %75 : vector<16x16xf32>
    %84 = arith.addf %57, %58 : vector<16x16xf32>
    %85 = vector.broadcast %0 : f32 to vector<16x16xf32>
    %86 = arith.addf %84, %85 : vector<16x16xf32>
    %87 = arith.mulf %86, %78 : vector<16x16xf32>
    %88 = arith.divf %83, %87 : vector<16x16xf32>
    %cst_44 = arith.constant dense<0.000000e+00> : vector<16xf32>
    %89 = vector.multi_reduction <add>, %88, %cst_44 [0] : vector<16x16xf32> to vector<16xf32>
    %90 = vector.shape_cast %89 : vector<16xf32> to vector<1x16xf32>
    %91 = arith.addf %46, %90 : vector<1x16xf32>
    %c0_45 = arith.constant 0 : index
    %c0_46 = arith.constant 0 : index
    %c0_47 = arith.constant 0 : index
    %92 = vector.load %arg6[%c0_45, %c0_46, %c0_47] : memref<1x1x16xf32, #tpu.memory_space<vmem>>, vector<1x1x16xf32>
    %93 = vector.shape_cast %92 : vector<1x1x16xf32> to vector<1x16xf32>
    %94 = vector.shape_cast %91 : vector<1x16xf32> to vector<1x1x16xf32>
    tpu.vector_store %arg6[%c0_45, %c0_46, %c0_47], %94 {strides = array<i32>} : memref<1x1x16xf32, #tpu.memory_space<vmem>>, vector<1x1x16xf32>,
    return
  }
  func.func @transform_0(%arg0: i32, %arg1: memref<2xf32, #tpu.memory_space<smem>>) -> (i32, i32, i32) {
    %c0_i32 = arith.constant 0 : i32
    %c0_i32_0 = arith.constant 0 : i32
    %c0_i32_1 = arith.constant 0 : i32
    return %arg0, %c0_i32, %c0_i32_0 : i32, i32, i32
  }
  func.func @transform_1(%arg0: i32, %arg1: memref<2xf32, #tpu.memory_space<smem>>) -> (i32, i32, i32) {
    %c0_i32 = arith.constant 0 : i32
    %c0_i32_0 = arith.constant 0 : i32
    %c0_i32_1 = arith.constant 0 : i32
    return %arg0, %c0_i32, %c0_i32_0 : i32, i32, i32
  }
  func.func @transform_2(%arg0: i32, %arg1: memref<2xf32, #tpu.memory_space<smem>>) -> (i32, i32, i32) {
    %c0_i32 = arith.constant 0 : i32
    %c0_i32_0 = arith.constant 0 : i32
    %c0_i32_1 = arith.constant 0 : i32
    %c0_i32_2 = arith.constant 0 : i32
    return %c0_i32, %c0_i32_0, %c0_i32_1 : i32, i32, i32
  }
  func.func @transform_3(%arg0: i32, %arg1: memref<2xf32, #tpu.memory_space<smem>>) -> (i32, i32) {
    %c0_i32 = arith.constant 0 : i32
    %c0_i32_0 = arith.constant 0 : i32
    %c0_i32_1 = arith.constant 0 : i32
    return %c0_i32, %c0_i32_0 : i32, i32
  }
  func.func @transform_4(%arg0: i32, %arg1: memref<2xf32, #tpu.memory_space<smem>>) -> (i32, i32, i32) {
    %c0_i32 = arith.constant 0 : i32
    %c0_i32_0 = arith.constant 0 : i32
    %c0_i32_1 = arith.constant 0 : i32
    return %arg0, %c0_i32, %c0_i32_0 : i32, i32, i32
  }
}

</mosaic_0001>

<bundles_post_ra>
// kernel: ssim_loss.1
= control target key start
LH: loop header
LB: loop body
LE: loop exit
PB: predicated region body
PF: predicated region fallthrough
CT: control target
= control target key end

     0   :  { %s2750_s0 = inlined_call_operand.vmem [shape: f32[2], index: 0, kind: input, shape index: {}]   ;;  %s2751_s1 = inlined_call_operand.vmem [shape: f32[8,16,16], index: 1, kind: input, shape index: {}]   ;;  %s2752_s2 = inlined_call_operand.hbm [shape: f32[8,16,16], index: 2, kind: input, shape index: {}]   ;;  %s2753_s3 = inlined_call_operand.vmem [shape: f32[1,16,16], index: 3, kind: input, shape index: {}]   ;;  %s2754_s4 = inlined_call_operand.vmem [shape: f32[16,16], index: 4, kind: input, shape index: {}]   ;;  %s2755_s5 = inlined_call_operand.vmem [shape: f32[4,1,16], index: 5, kind: output, shape index: {}]  }
   0x1   :  { %s10_s20 = sshll.u32 %s2750_s0, 4  ;;  %s11_s20 = int_to_ptr.vmem [resolvable:$true] %s10_s20 }
   0x2   :  { %s2421_s21 = scalar_lea.vmem %s11_s20, 16  ;;  %p2426_p1 = scmp.lt.s32.totalorder %s11_s20, %s11_s20 }
   0x3   :  { %p2422_p0 = scmp.ne.s32.totalorder %s11_s20, %s2421_s21  ;;  %p2427_p2 = scmp.lt.s32.totalorder %s2421_s21, %s2421_s21 }
   0x5   :  { %p2428_p3 = por %p2427_p2, %p2426_p1 }
   0x7   :  { %p2429_p4 = pnand %p2428_p3, %p2422_p0 }
   0x9   :  { %2432 = shalt.err (!%p2429_p4)  }
   0xa   :  { %s2501_s22 = smov [#allocation3]  }
   0xb   :  { %13 = dma.vmem_to_smem %s11_s20, 16, %s2501_s22, [#allocation2] }
   0xc   :  { %2479 = dma.done.wait [#allocation2], 16 }
   0xd   :  { %2480 = vsyncadd [#allocation2], 4294967280 }
   0xe   :  { %15 = sfence }
   0xf   :  { %16 = vsyncpa [#allocation5], 0 }
  0x10   :  { %18 = vsyncpa [#allocation5 + $0x1], 0  ;;  %s2538_s23 = smov 0   ;;  %s2540_s24 = smov 0  }
  0x11   :  { %s2542_s0 = smov 0   ;;  %s2544_s25 = smov 0  }
  0x12 LB: > { %s2557_s26 = sadd.s32 4294967295, %s2499_s25   ;;  %s2560_s27 = sadd.s32 1, %s2499_s25   ;;  %s2499_s25 = sphi %s2544_s25, %s2762_s25   ;;  %s2495_s0 = sphi %s2542_s0, %s2761_s0   ;;  %s2491_s24 = sphi %s2540_s24, %s2760_s24   ;;  %s2487_s23 = sphi %s2538_s23, %s2759_s23  }
  0x13   : > { %s54_s28 = ssub.s32 %s2499_s25, %s2560_s27  ;;  %s57_s29 = sadd.s32 1, %s2495_s0 }
  0x14   : > { %p55_p5 = scmp.eq.s32.totalorder %s54_s28, 0  ;;  %p64_p6 = scmp.ne.s32.totalorder %s2495_s0, %s2491_s24 }
  0x15   : > { %p65_p7 = scmp.eq.s32.totalorder %s2499_s25, 0  ;;  %p70_p8 = scmp.ne.s32.totalorder %s2491_s24, %s2487_s23 }
  0x16   : > { %s2570_s30 = scalar_select %p55_p5, %s2495_s0, %s57_s29  }
  0x17   : > { %p66_p9 = por %p65_p7, %p64_p6  ;;  %p71_p10 = scmp.eq.s32.totalorder %s2557_s26, 0 }
  0x18   : > { %p2377_p11 = scmp.lt.s32.totalorder %s2499_s25, 4  ;;  %s178_s7 = sand.u32 1, %s2495_s0  }
  0x19   : > { %p2574_p12 = por %p71_p10, %p70_p8  ;;  %s2012_s8 = sshll.u32 %s178_s7, 5 }
  0x1a   : > { %s2069_s9 = sshll.u32 %s2499_s25, 9  ;;  %s182_s13 = scalar_lea.vmem [#allocation4], %s2012_s8 }
  0x1b   : > { %s2583_s12 = scalar_lea.hbm %s2752_s2, %s2069_s9  ;;  %s190_s14 = sshll.u32 %s182_s13, 4  ;;  %s2585_s14 = int_to_ptr.vmem [resolvable:$true] %s190_s14 }
  0x1c   : > { %p2587_p13 = pnand %p2377_p11, %p66_p9  ;;  %s2592_s16 = scalar_lea.sflag [#allocation5], %s178_s7 }
  0x1d   : > { %s2433_s17 = scalar_lea.hbm %s2583_s12, 512  ;;  %s2438_s20 = scalar_lea.hbm %s2752_s2, 2048 }
  0x1e   : > { %p2434_p1 = scmp.ne.s32.totalorder %s2583_s12, %s2433_s17  ;;  %p2435_p2 = pneg %p2587_p13 }
  0x1f   : > { %p2439_p5 = scmp.lt.u32.totalorder %s2583_s12, %s2752_s2  ;;  %p2440_p6 = scmp.lt.u32.totalorder %s2438_s20, %s2433_s17 }
  0x20   : > { %p2436_p3 = pnand %p2435_p2, %p2434_p1  ;;  %p2442_p8 = scmp.lt.u32.totalorder %s2433_s17, %s2583_s12 }
  0x21   : > { %p2441_p7 = por %p2440_p6, %p2439_p5 }
  0x22   : > { %p2437_p4 = pneg %p2436_p3 }
  0x23   : > { %p2443_p9 = por %p2442_p8, %p2441_p7 }
  0x25   : > { %p2444_p10 = pnand %p2443_p9, %p2437_p4 }
  0x27   : > { %2447 = shalt.err (!%p2444_p10)
}
  0x28   : > { %s2448_s23 = scalar_lea.vmem %s2585_s14, 512  ;;  %s2502_s28 = smov [#allocation4]  }
  0x29   : > { %p2449_p11 = scmp.ne.s32.totalorder %s2585_s14, %s2448_s23  ;;  %s2453_s29 = sshll.u32 %s2502_s28, 4  ;;  %s2454_s29 = int_to_ptr.vmem [resolvable:$false] %s2453_s29 }
  0x2a   : > { %s2455_s7 = scalar_lea.vmem %s2454_s29, 1024  ;;  %p2456_p0 = scmp.lt.s32.totalorder %s2585_s14, %s2454_s29 }
  0x2b   : > { %p2451_p1 = pnand %p2449_p11, %p2435_p2  ;;  %p2457_p5 = scmp.lt.s32.totalorder %s2455_s7, %s2448_s23 }
  0x2d   : > { %p2452_p3 = pneg %p2451_p1  ;;  %p2458_p6 = por %p2457_p5, %p2456_p0 }
  0x2f   : > { %p2459_p7 = pnand %p2458_p6, %p2452_p3 }
  0x31   : > { %2462 = shalt.err (!%p2459_p7)
}
  0x32   : > { %s2503_s8 = smov 128   ;;  %s2504_s9 = smov 8  }
  0x33   : > { %2376 = dma.hbm_to_vmem [thread:$0]  (!%p2587_p13), %s2583_s12, 512, %s2585_s14, %s2592_s16, %s2503_s8, %s2503_s8, %s2504_s9  }
  0x34   : > { %p198_p2 = scmp.lt.s32.totalorder %s2499_s25, 5  ;;  %p2758_p4 = scmp.ge.s32.totalorder %s2499_s25, 1 }
  0x36   : > { %p199_p8 = pnand %p2758_p4, %p198_p2 }
  0x37   : > { %s204_s10 = sand.u32 (!%p199_p8), 1, %s2491_s24  }
  0x38   : > { %202 = sbr.rel (%p199_p8) target bundleno = 575 (0x23f), region = 36  ;;  %s2017_s11 = sshll.u32 (!%p199_p8), %s204_s10, 5 }
  0x39   : > { %s205_s13 = scalar_lea.sflag (!%p199_p8), [#allocation5], %s204_s10  ;;  %s2624_s17 = scalar_lea.vmem (!%p199_p8), [#allocation4], %s2017_s11 }
  0x3f   : > { %2482 = dma.done.wait (%p2574_p12), %s205_s13, 512  }
  0x40   : > { %2484 = vsyncadd (%p2574_p12), %s205_s13, 4294966784  ;;  %s2018_s15 = sshll.u32 %s2557_s26, 1  ;;  %vm258_vm0 = vcmask 130048   ;;  %v256_v0 = vld [vmem:[%s2753_s3] sm:$0xff]  ;;  %v257_v1 = vld [vmem:[%s2753_s3 + $0x8] sm:$0xff]  ;;  %s248_s29 = sld [smem:[#allocation3]] }
  0x41   : > { %p238_p13 = scmp.lt.s32.totalorder %s2018_s15, 7  ;;  %v2291_v3 = vpack.c.bf16 %v257_v1, %v256_v0  ;;  %v254_v5 = vld [vmem:[%s2624_s17] sm:$0xff]  ;;  %v255_v7 = vld [vmem:[%s2624_s17 + $0x8] sm:$0xff]  ;;  %v2044_v15 = vld [vmem:[%s2624_s17 + $0x10] sm:$0xff]  ;;  %s2021_s7 = sld [smem:[#allocation3 + $0x1]]  ;;  %vm1936_vm1 = vcmask 122880  }
  0x42   : > { %v743_v9 = vmul.f32 %v254_v5, %v254_v5  ;;  %v744_v10 = vmul.f32 %v255_v7, %v255_v7  ;;  %v2045_v17 = vld [vmem:[%s2624_s17 + $0x18] sm:$0xff]  ;;  %v1582_v19 = vmul.f32 %v2044_v15, %v2044_v15  ;;  %v2673_v23 = vld [vmem:[%s2754_s4] sm:$0xff]  ;;  %v251_v29 = vld [vmem:[%s2754_s4 + $0x8] sm:$0xff]  ;;  %p245_p12 = scmp.lt.s32.totalorder %s2557_s26, 3 }
  0x43   : > { %s2764_s15 = smov (!%p238_p13, %s2018_s15), 7  ;;  %2292 = vmatprep.subr.bf16.mxu0 %v2291_v3  ;;  %v1583_v20 = vmul.f32 %v2045_v17, %v2045_v17  ;;  %2162 = vmatprep.mubr.msk.f32.mxu1 %vm258_vm0, %v2673_v23 }
  0x44   : > { %s2070_s25 = sshll.u32 %s2764_s15, 4  ;;  %2294 = vmatpush3.bf16.msra.mxu0 %v2291_v3  ;;  %s2766_s26 = smov (!%p245_p12, %s2557_s26), 3 }
  0x45   : > { %s2634_s16 = scalar_lea.vmem %s2751_s1, %s2070_s25  ;;  %2300 = vmatprep.subr.bf16.mxu0 %v2291_v3  ;;  %s247_s10 = scalar_lea.vmem %s2755_s5, %s2766_s26 }
  0x46   : > { %v252_v2 = vld [vmem:[%s2634_s16] sm:$0xff]  ;;  %v253_v4 = vld [vmem:[%s2634_s16 + $0x8] sm:$0xff]  ;;  %v2042_v13 = vld [vmem:[%s2634_s16 + $0x10] sm:$0xff] }
  0x47   : > { %2155 = vmatprep.mubr.msk.f32.mxu0 %vm258_vm0, %v252_v2  ;;  %v583_v6 = vmul.f32 %v252_v2, %v252_v2  ;;  %v584_v8 = vmul.f32 %v253_v4, %v253_v4  ;;  %v903_v11 = vmul.f32 %v254_v5, %v252_v2  ;;  %v904_v12 = vmul.f32 %v255_v7, %v253_v4  ;;  %v2043_v14 = vld [vmem:[%s2634_s16 + $0x18] sm:$0xff] }
  0x48   : > { %2156 = vmatmul.mubr.msk.f32.vlgmr.msra.gmra.mrb[0].mxu0 %vm258_vm0, %v253_v4  ;;  %v1422_v16 = vmul.f32 %v2042_v13, %v2042_v13  ;;  %v1423_v18 = vmul.f32 %v2043_v14, %v2043_v14  ;;  %v1742_v21 = vmul.f32 %v2044_v15, %v2042_v13  ;;  %v1743_v22 = vmul.f32 %v2045_v17, %v2043_v14 }
  0x49   : > { %2302 = vmatpush3.bf16.msra.mxu0 %v2291_v3  ;;  %2169 = vmatprep.mubr.msk.f32.mxu0 %vm258_vm0, %v254_v5 }
  0x4a   : > { %2308 = vmatprep.subr.bf16.mxu0 %v2291_v3 }
  0x4c   : > { %2170 = vmatmul.mubr.msk.f32.vlgmr.msra.gmra.mrb[2].mxu0 %vm258_vm0, %v255_v7 }
  0x4d   : > { %2310 = vmatpush3.bf16.msra.mxu0 %v2291_v3  ;;  %2183 = vmatprep.mubr.msk.f32.mxu0 %vm258_vm0, %v583_v6 }
  0x4e   : > { %2316 = vmatprep.subr.bf16.mxu0 %v2291_v3 }
  0x50   : > { %2184 = vmatmul.mubr.msk.f32.vlgmr.msra.gmra.mrb[4].mxu0 %vm258_vm0, %v584_v8 }
  0x51   : > { %2318 = vmatpush3.bf16.msra.mxu0 %v2291_v3  ;;  %2197 = vmatprep.mubr.msk.f32.mxu0 %vm258_vm0, %v743_v9 }
  0x52   : > { %2324 = vmatprep.subr.bf16.mxu0 %v2291_v3 }
  0x54   : > { %2198 = vmatmul.mubr.msk.f32.vlgmr.msra.gmra.mrb[6].mxu0 %vm258_vm0, %v744_v10  ;;  %v2708_v10 = vstv %s248_s29 }
  0x55   : > { %2326 = vmatpush3.bf16.msra.mxu0 %v2291_v3  ;;  %2211 = vmatprep.mubr.msk.f32.mxu0 %vm258_vm0, %v903_v11  ;;  %v2710_v11 = vstv %s2021_s7 }
  0x56   : > { %2332 = vmatprep.subr.bf16.mxu0 %v2291_v3 }
  0x58   : > { %2212 = vmatmul.mubr.msk.f32.vlgmr.msra.gmra.mrb[8].mxu0 %vm258_vm0, %v904_v12 }
  0x59   : > { %2334 = vmatpush3.bf16.msra.mxu0 %v2291_v3  ;;  %2225 = vmatprep.mubr.msk.f32.mxu0 %vm258_vm0, %v2042_v13 }
  0x5a   : > { %2340 = vmatprep.subr.bf16.mxu0 %v2291_v3 }
  0x5c   : > { %2226 = vmatmul.mubr.msk.f32.vlgmr.msra.gmra.mrb[10].mxu0 %vm258_vm0, %v2043_v14 }
  0x5d   : > { %2342 = vmatpush3.bf16.msra.mxu0 %v2291_v3  ;;  %2239 = vmatprep.mubr.msk.f32.mxu0 %vm258_vm0, %v2044_v15 }
  0x5e   : > { %2348 = vmatprep.subr.bf16.mxu0 %v2291_v3 }
  0x60   : > { %2240 = vmatmul.mubr.msk.f32.vlgmr.msra.gmra.mrb[12].mxu0 %vm258_vm0, %v2045_v17 }
  0x61   : > { %2350 = vmatpush3.bf16.msra.mxu0 %v2291_v3  ;;  %2253 = vmatprep.mubr.msk.f32.mxu0 %vm258_vm0, %v1422_v16 }
  0x62   : > { %2356 = vmatprep.subr.bf16.mxu0 %v2291_v3 }
  0x64   : > { %2254 = vmatmul.mubr.msk.f32.vlgmr.msra.gmra.mrb[14].mxu0 %vm258_vm0, %v1423_v18 }
  0x65   : > { %2358 = vmatpush3.bf16.msra.mxu0 %v2291_v3  ;;  %2267 = vmatprep.mubr.msk.f32.mxu0 %vm258_vm0, %v1582_v19 }
  0x66   : > { %2364 = vmatprep.subr.bf16.mxu0 %v2291_v3 }
  0x68   : > { %2268 = vmatmul.mubr.msk.f32.vlgmr.msra.gmra.mrb[16].mxu0 %vm258_vm0, %v1583_v20 }
  0x69   : > { %2366 = vmatpush3.bf16.msra.mxu0 %v2291_v3  ;;  %2281 = vmatprep.mubr.msk.f32.mxu0 %vm258_vm0, %v1742_v21 }
  0x6c   : > { %2282 = vmatmul.mubr.msk.f32.vlgmr.msra.gmra.mrb[18].mxu0 %vm258_vm0, %v1743_v22 }
 0x11b   : > { %v2157_v24 = vpop.f32.mrb[0].mxu0 }
 0x11c   : > { %v331_v25 = vpop.f32.mrb[1].mxu0 }
 0x11d   : > { %v2295_v26 = vpack.c.bf16 %v2157_v24, %v331_v25 }
 0x11f   : > { %2296 = vmatprep.subr.bf16.mxu1 %v2295_v26  ;;  %v2171_v27 = vpop.f32.mrb[2].mxu0 }
 0x120   : > { %2298 = vmatpush3.bf16.msra.mxu1 %v2295_v26  ;;  %v493_v28 = vpop.f32.mrb[3].mxu0 }
 0x121   : > { %v2303_v30 = vpack.c.bf16 %v2171_v27, %v493_v28 }
 0x123   : > { %2163 = vmatmul.mubr.msk.f32.vlgmr.msra.gmra.mrb[0].mxu1 %vm258_vm0, %v251_v29  ;;  %2304 = vmatprep.subr.bf16.mxu1 %v2303_v30  ;;  %v2185_v31 = vpop.f32.mrb[4].mxu0 }
 0x124   : > { %2306 = vmatpush3.bf16.msra.mxu1 %v2303_v30  ;;  %v657_v32 = vpop.f32.mrb[5].mxu0  ;;  %2176 = vmatprep.mubr.msk.f32.mxu1 %vm258_vm0, %v2673_v23 }
 0x125   : > { %v2311_v33 = vpack.c.bf16 %v2185_v31, %v657_v32 }
 0x127   : > { %2177 = vmatmul.mubr.msk.f32.vlgmr.msra.gmra.mrb[2].mxu1 %vm258_vm0, %v251_v29  ;;  %2312 = vmatprep.subr.bf16.mxu1 %v2311_v33  ;;  %v2199_v34 = vpop.f32.mrb[6].mxu0 }
 0x128   : > { %2314 = vmatpush3.bf16.msra.mxu1 %v2311_v33  ;;  %v817_v35 = vpop.f32.mrb[7].mxu0  ;;  %2190 = vmatprep.mubr.msk.f32.mxu1 %vm258_vm0, %v2673_v23 }
 0x129   : > { %v2319_v36 = vpack.c.bf16 %v2199_v34, %v817_v35 }
 0x12b   : > { %2191 = vmatmul.mubr.msk.f32.vlgmr.msra.gmra.mrb[4].mxu1 %vm258_vm0, %v251_v29  ;;  %2320 = vmatprep.subr.bf16.mxu1 %v2319_v36  ;;  %v2213_v37 = vpop.f32.mrb[8].mxu0 }
 0x12c   : > { %2322 = vmatpush3.bf16.msra.mxu1 %v2319_v36  ;;  %v977_v38 = vpop.f32.mrb[9].mxu0  ;;  %2204 = vmatprep.mubr.msk.f32.mxu1 %vm258_vm0, %v2673_v23 }
 0x12d   : > { %v2327_v39 = vpack.c.bf16 %v2213_v37, %v977_v38 }
 0x12f   : > { %2205 = vmatmul.mubr.msk.f32.vlgmr.msra.gmra.mrb[6].mxu1 %vm258_vm0, %v251_v29  ;;  %2328 = vmatprep.subr.bf16.mxu1 %v2327_v39  ;;  %v2227_v40 = vpop.f32.mrb[10].mxu0 }
 0x130   : > { %2330 = vmatpush3.bf16.msra.mxu1 %v2327_v39  ;;  %v1176_v41 = vpop.f32.mrb[11].mxu0  ;;  %2218 = vmatprep.mubr.msk.f32.mxu1 %vm258_vm0, %v2673_v23 }
 0x131   : > { %v2335_v42 = vpack.c.bf16 %v2227_v40, %v1176_v41 }
 0x133   : > { %2219 = vmatmul.mubr.msk.f32.vlgmr.msra.gmra.mrb[8].mxu1 %vm258_vm0, %v251_v29  ;;  %2336 = vmatprep.subr.bf16.mxu1 %v2335_v42  ;;  %v2241_v43 = vpop.f32.mrb[12].mxu0 }
 0x134   : > { %2338 = vmatpush3.bf16.msra.mxu1 %v2335_v42  ;;  %v1332_v44 = vpop.f32.mrb[13].mxu0  ;;  %2232 = vmatprep.mubr.msk.f32.mxu1 %vm258_vm0, %v2673_v23 }
 0x135   : > { %v2343_v45 = vpack.c.bf16 %v2241_v43, %v1332_v44 }
 0x137   : > { %2233 = vmatmul.mubr.msk.f32.vlgmr.msra.gmra.mrb[10].mxu1 %vm258_vm0, %v251_v29  ;;  %2344 = vmatprep.subr.bf16.mxu1 %v2343_v45  ;;  %v2255_v46 = vpop.f32.mrb[14].mxu0 }
 0x138   : > { %2346 = vmatpush3.bf16.msra.mxu1 %v2343_v45  ;;  %v1496_v47 = vpop.f32.mrb[15].mxu0  ;;  %2246 = vmatprep.mubr.msk.f32.mxu1 %vm258_vm0, %v2673_v23 }
 0x139   : > { %v2351_v48 = vpack.c.bf16 %v2255_v46, %v1496_v47 }
 0x13b   : > { %2247 = vmatmul.mubr.msk.f32.vlgmr.msra.gmra.mrb[12].mxu1 %vm258_vm0, %v251_v29  ;;  %2352 = vmatprep.subr.bf16.mxu1 %v2351_v48  ;;  %v2269_v49 = vpop.f32.mrb[16].mxu0 }
 0x13c   : > { %2354 = vmatpush3.bf16.msra.mxu1 %v2351_v48  ;;  %v1656_v50 = vpop.f32.mrb[17].mxu0  ;;  %2260 = vmatprep.mubr.msk.f32.mxu1 %vm258_vm0, %v2673_v23 }
 0x13d   : > { %v2359_v51 = vpack.c.bf16 %v2269_v49, %v1656_v50 }
 0x13f   : > { %2261 = vmatmul.mubr.msk.f32.vlgmr.msra.gmra.mrb[14].mxu1 %vm258_vm0, %v251_v29  ;;  %2360 = vmatprep.subr.bf16.mxu1 %v2359_v51  ;;  %v2283_v52 = vpop.f32.mrb[18].mxu0 }
 0x140   : > { %2362 = vmatpush3.bf16.msra.mxu1 %v2359_v51  ;;  %v1816_v53 = vpop.f32.mrb[19].mxu0  ;;  %2274 = vmatprep.mubr.msk.f32.mxu1 %vm258_vm0, %v2673_v23 }
 0x141   : > { %v2367_v54 = vpack.c.bf16 %v2283_v52, %v1816_v53 }
 0x143   : > { %2275 = vmatmul.mubr.msk.f32.vlgmr.msra.gmra.mrb[16].mxu1 %vm258_vm0, %v251_v29  ;;  %2368 = vmatprep.subr.bf16.mxu1 %v2367_v54 }
 0x144   : > { %2370 = vmatpush3.bf16.msra.mxu1 %v2367_v54  ;;  %2288 = vmatprep.mubr.msk.f32.mxu1 %vm258_vm0, %v2673_v23 }
 0x147   : > { %2289 = vmatmul.mubr.msk.f32.vlgmr.msra.gmra.mrb[18].mxu1 %vm258_vm0, %v251_v29 }
 0x1f6   : > { %v2164_v55 = vpop.f32.mrb[0].mxu1 }
 0x1f7   : > { %v412_v56 = vpop.f32.mrb[1].mxu1  ;;  %v578_v58 = vmul.f32 %v2164_v55, %v2164_v55 }
 0x1f8   : > { %v577_v62 = vmul.f32 %v412_v56, %v412_v56 }
 0x1fa   : > { %v2178_v57 = vpop.f32.mrb[2].mxu1 }
 0x1fb   : > { %v580_v59 = vmul.f32 %v2178_v57, %v2178_v57  ;;  %v582_v60 = vmul.f32 %v2178_v57, %v2164_v55  ;;  %v568_v61 = vpop.f32.mrb[3].mxu1 }
 0x1fc   : > { %v579_v63 = vmul.f32 %v568_v61, %v568_v61  ;;  %v581_v0 = vmul.f32 %v568_v61, %v412_v56 }
 0x1fd   : > { %v1080_v1 = vadd.f32 %v580_v59, %v578_v58  ;;  %v1073_v16 = vmul.f32 2.0, %v582_v60 }
 0x1fe   : > { %v1079_v2 = vadd.f32 %v579_v63, %v577_v62  ;;  %v2192_v3 = vpop.f32.mrb[4].mxu1  ;;  %v1072_v21 = vmul.f32 2.0, %v581_v0 }
 0x1ff   : > { %v742_v4 = vsub.f32 %v2192_v3, %v578_v58  ;;  %v732_v5 = vpop.f32.mrb[5].mxu1  ;;  %v1082_v17 = vadd.f32 %v1080_v1, %v2708_v10  ;;  %v1076_v30 = vadd.f32 %v2708_v10, %v1073_v16 }
 0x200   : > { %v741_v6 = vsub.f32 %v732_v5, %v577_v62  ;;  %v1081_v22 = vadd.f32 %v1079_v2, %v2708_v10  ;;  %v1075_v33 = vadd.f32 %v2708_v10, %v1072_v21 }
 0x202   : > { %v2206_v7 = vpop.f32.mrb[6].mxu1 }
 0x203   : > { %v902_v8 = vsub.f32 %v2206_v7, %v580_v59  ;;  %v892_v9 = vpop.f32.mrb[7].mxu1 }
 0x204   : > { %v901_v12 = vsub.f32 %v892_v9, %v579_v63 }
 0x205   : > { %v1069_v13 = vadd.f32 %v902_v8, %v742_v4 }
 0x206   : > { %v1068_v14 = vadd.f32 %v901_v12, %v741_v6  ;;  %v2220_v15 = vpop.f32.mrb[8].mxu1 }
 0x207   : > { %v1071_v18 = vadd.f32 %v1069_v13, %v2710_v11  ;;  %v1062_v19 = vsub.f32 %v2220_v15, %v582_v60  ;;  %v1052_v20 = vpop.f32.mrb[9].mxu1 }
 0x208   : > { %v1070_v23 = vadd.f32 %v1068_v14, %v2710_v11  ;;  %v1061_v24 = vsub.f32 %v1052_v20, %v581_v0 }
 0x209   : > { %v1084_v25 = vmul.f32 %v1082_v17, %v1071_v18  ;;  %v1064_v26 = vmul.f32 2.0, %v1062_v19 }
 0x20a   : > { %v1083_v27 = vmul.f32 %v1081_v22, %v1070_v23  ;;  %v1063_v28 = vmul.f32 2.0, %v1061_v24  ;;  %v2234_v29 = vpop.f32.mrb[10].mxu1 }
 0x20b   : > { %2413 = vrcp.f32 %v1084_v25  ;;  %v1067_v31 = vadd.f32 %v2710_v11, %v1064_v26  ;;  %v1251_v32 = vpop.f32.mrb[11].mxu1  ;;  %v1417_v38 = vmul.f32 %v2234_v29, %v2234_v29 }
 0x20c   : > { %2415 = vrcp.f32 %v1083_v27  ;;  %v1066_v34 = vadd.f32 %v2710_v11, %v1063_v28  ;;  %v1416_v42 = vmul.f32 %v1251_v32, %v1251_v32 }
 0x20d   : > { %v1078_v35 = vmul.f32 %v1076_v30, %v1067_v31 }
 0x20e   : > { %v1077_v36 = vmul.f32 %v1075_v33, %v1066_v34  ;;  %v2248_v37 = vpop.f32.mrb[12].mxu1 }
 0x20f   : > { %v1419_v39 = vmul.f32 %v2248_v37, %v2248_v37  ;;  %v1421_v40 = vmul.f32 %v2248_v37, %v2234_v29  ;;  %v1407_v41 = vpop.f32.mrb[13].mxu1 }
 0x210   : > { %v1418_v43 = vmul.f32 %v1407_v41, %v1407_v41  ;;  %v1420_v44 = vmul.f32 %v1407_v41, %v1251_v32 }
 0x211   : > { %v1917_v45 = vadd.f32 %v1419_v39, %v1417_v38  ;;  %v1911_v1 = vmul.f32 2.0, %v1421_v40 }
 0x212   : > { %v1916_v46 = vadd.f32 %v1418_v43, %v1416_v42  ;;  %v2262_v47 = vpop.f32.mrb[14].mxu1  ;;  %v1910_v6 = vmul.f32 2.0, %v1420_v44 }
 0x213   : > { %v1581_v48 = vsub.f32 %v2262_v47, %v1417_v38  ;;  %v1571_v49 = vpop.f32.mrb[15].mxu1  ;;  %v1919_v2 = vadd.f32 %v1917_v45, %v2708_v10  ;;  %v1913_v16 = vadd.f32 %v1911_v1, %v2708_v10 }
 0x214   : > { %v1580_v50 = vsub.f32 %v1571_v49, %v1416_v42  ;;  %v1918_v7 = vadd.f32 %v1916_v46, %v2708_v10  ;;  %v1912_v18 = vadd.f32 %v1910_v6, %v2708_v10 }
 0x215   : > { %v2414_v51 = vpop.eup %2413 }
 0x216   : > { %v2416_v52 = vpop.eup %2415  ;;  %v1088_v53 = vmul.f32 %v2414_v51, %v1078_v35  ;;  %v2276_v54 = vpop.f32.mrb[16].mxu1 }
 0x217   : > { %v1086_v55 = vmul.f32 %v2416_v52, %v1077_v36  ;;  %v1741_v56 = vsub.f32 %v2276_v54, %v1419_v39  ;;  %v1731_v57 = vpop.f32.mrb[17].mxu1 }
 0x218   : > { %v1090_v58 = vsel %vm258_vm0, %v1088_v53, 0.0  ;;  %v1740_v59 = vsub.f32 %v1731_v57, %v1418_v43 }
 0x219   : > { %v1089_v60 = vsel %vm258_vm0, %v1086_v55, 0.0  ;;  %v1907_v61 = vadd.f32 %v1741_v56, %v1581_v48 }
 0x21a   : > { %v1091_v62 = vadd.f32 %v1090_v58, %v1089_v60  ;;  %v1906_v63 = vadd.f32 %v1740_v59, %v1580_v50  ;;  %v2290_v0 = vpop.f32.mrb[18].mxu1 }
 0x21b   : > { %v1909_v3 = vadd.f32 %v1907_v61, %v2710_v11  ;;  %v1901_v4 = vsub.f32 %v2290_v0, %v1421_v40  ;;  %v1891_v5 = vpop.f32.mrb[19].mxu1 }
 0x21c   : > { %v1908_v8 = vadd.f32 %v1906_v63, %v2710_v11  ;;  %v1900_v9 = vsub.f32 %v1891_v5, %v1420_v44  ;;  %v1092_v22 = vrot.slane %v1091_v62, 4 }
 0x21d   : > { %v1921_v12 = vmul.f32 %v1919_v2, %v1909_v3  ;;  %v1903_v13 = vmul.f32 2.0, %v1901_v4 }
 0x21e   : > { %v1920_v14 = vmul.f32 %v1918_v7, %v1908_v8  ;;  %v1902_v15 = vmul.f32 2.0, %v1900_v9  ;;  %v1093_v25 = vadd.f32 %v1092_v22, %v1091_v62 }
 0x21f   : > { %2417 = vrcp.f32 %v1921_v12  ;;  %v1905_v17 = vadd.f32 %v1903_v13, %v2710_v11 }
 0x220   : > { %2419 = vrcp.f32 %v1920_v14  ;;  %v1904_v19 = vadd.f32 %v1902_v15, %v2710_v11  ;;  %v1094_v30 = vrot.slane %v1093_v25, 2 }
 0x221   : > { %v1915_v20 = vmul.f32 %v1913_v16, %v1905_v17 }
 0x222   : > { %v1914_v21 = vmul.f32 %v1912_v18, %v1904_v19  ;;  %v1095_v32 = vadd.f32 %v1094_v30, %v1093_v25 }
 0x224   : > { %v1096_v34 = vrot.slane %v1095_v32, 1 }
 0x226   : > { %v1097_v37 = vadd.f32 %v1096_v34, %v1095_v32 }
 0x229   : > { %v2418_v23 = vpop.eup %2417 }
 0x22a   : > { %v2420_v24 = vpop.eup %2419  ;;  %v1925_v26 = vmul.f32 %v2418_v23, %v1915_v20 }
 0x22b   : > { %v1923_v27 = vmul.f32 %v2420_v24, %v1914_v21 }
 0x22c   : > { %v1927_v28 = vsel %vm258_vm0, %v1925_v26, 0.0 }
 0x22d   : > { %v1926_v29 = vsel %vm258_vm0, %v1923_v27, 0.0 }
 0x22e   : > { %v1928_v31 = vadd.f32 %v1927_v28, %v1926_v29 }
 0x230   : > { %v1929_v10 = vrot.slane %v1928_v31, 4 }
 0x232   : > { %v1930_v33 = vadd.f32 %v1929_v10, %v1928_v31 }
 0x234   : > { %v1931_v11 = vrot.slane %v1930_v33, 2 }
 0x236   : > { %v1932_v35 = vadd.f32 %v1931_v11, %v1930_v33 }
 0x238   : > { %v1933_v36 = vrot.slane %v1932_v35, 1 }
 0x23a   : > { %v1934_v38 = vadd.f32 %v1933_v36, %v1932_v35 }
 0x23c   : > { %v1935_v39 = vadd.f32 %v1934_v38, %v1097_v37 }
 0x23e   : > { %1937 = vst.msk [vmem:[%s247_s10] sm:$0x1] %vm1936_vm1, %v1935_v39 }
 0x23f PF: > { %p21_p0 = scmp.ge.s32.totalorder %s2560_s27, 6   ;;  %s2759_s23 = smov %s2491_s24 }
 0x240   : > { %s2760_s24 = smov %s2495_s0  ;;  %s2761_s0 = smov %s2570_s30 }
 0x241   : > { %s2762_s25 = smov %s2560_s27  ;;  %23 = sbr.rel (!%p21_p0) target bundleno = 18 (0x12), region = 81 }
 0x248   :  { %1955 = vsyncpa [#allocation5], 1 }
 0x249   :  { %1957 = vsyncpa [#allocation5 + $0x1], 1 }

</bundles_post_ra>
